<compile_context>
chip_gen: v7x
topology: tpu7x:2x2x1
jax: 0.10.0
libtpu: 0.0.40
codegen_flags: <defaults>
</compile_context>

<pallas_src>
import functools
import math

import jax
import jax.numpy as jnp
from jax.experimental import pallas as pl
from jax.experimental.pallas import tpu as pltpu


def _round_up(a, b):
    return ((a + b - 1) // b) * b


def _parse_preproc_config(use_target_vec, use_relevances, input_size):
    """Mirror of get_gnn_input_pre_processor's config logic (no tensors)."""
    aux_keys = []
    widths = {}
    output_size = input_size
    only_relevance = False
    if use_target_vec is not None:
        aux_keys.append('target_vec')
        if use_target_vec == 'target-vec':
            widths['target_vec'] = 2
            output_size += 2
        elif use_target_vec == 'target-vec+dist':
            widths['target_vec'] = 3
            output_size += 3
        else:
            raise ValueError(f'Unsupported use_target_vec: {use_target_vec}')
    if use_relevances is not None:
        aux_keys.append('relevances')
        relevance_option = use_relevances
        if use_relevances.startswith('only-relevance'):
            only_relevance = True
            relevance_option = use_relevances[len('only-relevance-'):]
        if relevance_option == 'straight':
            widths['relevances'] = 5
            output_size += 5
        elif relevance_option == 'one-hot':
            widths['relevances'] = 25
            output_size += 25
        else:
            raise ValueError(f'Unsupported use_relevances: {use_relevances}')
    if only_relevance:
        output_size -= input_size
    return aux_keys, widths, only_relevance, output_size


# --------------------------------------------------------------------------
# Kernel
# --------------------------------------------------------------------------
def _concat_mlp_kernel(*refs, num_inputs, num_layers):
    """Fused (concat -> [Linear -> ReLU] * L) for one tile of rows.

    refs layout:
      refs[0:num_inputs]              input feature tiles          (TM, f_k) bf16
      refs[num_inputs:2*num_inputs]   layer-0 weight row-chunks    (f_k, E)  bf16
      refs[2*num_inputs]              all biases                   (L, 1, E) f32
      refs[2*num_inputs+1]            hidden-layer weights         (L-1,E,E) bf16   (only if L>1)
      refs[-1]                        output tile                  (TM, E)   f32
    """
    ins = refs[:num_inputs]
    w0 = refs[num_inputs:2 * num_inputs]
    b_all = refs[2 * num_inputs]
    wr = refs[2 * num_inputs + 1] if num_layers > 1 else None
    out_ref = refs[-1]

    # Layer 0: the preprocessor concat is folded into the matmul by splitting
    # the weight matrix row-wise per input tensor -> no lane-axis concat.
    acc = jnp.dot(ins[0][...], w0[0][...], preferred_element_type=jnp.float32)
    for k in range(1, num_inputs):
        acc = acc + jnp.dot(ins[k][...], w0[k][...],
                            preferred_element_type=jnp.float32)
    h = jnp.maximum(acc + b_all[0], 0.0)            # (TM, E) f32

    # Layers 1..L-1 (small static layer count -> trace-time unroll).
    for l in range(1, num_layers):
        w = wr[l - 1]                               # (E, E) bf16, static index
        h = jnp.maximum(
            jnp.dot(h.astype(w.dtype), w, preferred_element_type=jnp.float32)
            + b_all[l], 0.0)

    out_ref[...] = h.astype(out_ref.dtype)


# --------------------------------------------------------------------------
# One-time parameter preparation (hoisted out of the per-call path)
# --------------------------------------------------------------------------
def prepare_gnn_mlp_params(weights, biases, feat_splits,
                           *, compute_dtype=jnp.bfloat16):
    """Split layer-0 weights per input block, cast to MXU dtype, pack layers."""
    L = len(weights)
    E = int(weights[-1].shape[-1])
    w0 = jnp.asarray(weights[0], jnp.float32)
    assert int(w0.shape[0]) == sum(feat_splits), (w0.shape, feat_splits)
    chunks = []
    off = 0
    for f in feat_splits:
        chunks.append(w0[off:off + f, :].astype(compute_dtype))
        off += f
    b_all = jnp.stack(
        [jnp.asarray(b, jnp.float32).reshape(1, E) for b in biases], axis=0)
    params = {'w0_chunks': tuple(chunks), 'b_all': b_all}
    if L > 1:
        params['w_rest'] = jnp.stack(
            [jnp.asarray(w, jnp.float32).astype(compute_dtype)
             for w in weights[1:]], axis=0)
    return params


def prepare_gnn_input_processor_params(weights, biases, *, use_target_vec,
                                       use_relevances, input_size,
                                       compute_dtype=jnp.bfloat16):
    """Build the kernel parameter pytree once; reuse across forward calls."""
    if weights is None or len(weights) == 0:
        return None
    aux_keys, widths, only_rel, _ = _parse_preproc_config(
        use_target_vec, use_relevances, input_size)
    aux_w = sum(widths[k] for k in aux_keys)
    if only_rel:
        feat_splits = [aux_w]
    elif aux_keys:
        feat_splits = [input_size, aux_w]
    else:
        feat_splits = [input_size]
    return prepare_gnn_mlp_params(weights, biases, feat_splits,
                                  compute_dtype=compute_dtype)


# --------------------------------------------------------------------------
# Pallas wrapper
# --------------------------------------------------------------------------
def fused_concat_mlp(inputs, params, *, row_tile=2048):
    """relu(Linear(...relu(Linear(concat(inputs)))...)) via one Pallas kernel.

    inputs : list of arrays (..., f_k) sharing leading dims (already with the
             tiny aux tensors pre-concatenated into a single array).
    params : pytree from prepare_gnn_mlp_params.
    """
    w0_chunks = params['w0_chunks']
    b_all = params['b_all']
    w_rest = params.get('w_rest')
    num_layers = int(b_all.shape[0])
    E = int(b_all.shape[-1])
    compute_dtype = w0_chunks[0].dtype

    lead = inputs[0].shape[:-1]
    M = int(math.prod(lead)) if lead else 1
    feat = [int(a.shape[-1]) for a in inputs]
    assert len(feat) == len(w0_chunks)
    for f, w in zip(feat, w0_chunks):
        assert int(w.shape[0]) == f, (w.shape, f)

    flats = [a.reshape(M, f).astype(compute_dtype)
             for a, f in zip(inputs, feat)]

    # Row tile: large to amortize the ~0.35us/step fixed overhead.  For small
    # M, split into >=2 sublane-aligned tiles so the ("parallel",) grid axis
    # can keep both v7x TensorCores busy (neutral on v5e/v6e).
    if M > row_tile:
        TM = row_tile
    elif M > 8:
        TM = _round_up((M + 1) // 2, 8)
    else:
        TM = _round_up(max(M, 1), 8)
    M_pad = _round_up(M, TM)
    if M_pad != M:
        flats = [jnp.pad(a, ((0, M_pad - M), (0, 0))) for a in flats]

    grid = (M_pad // TM,)

    # Blocks whose last dim equals the full array dim are always legal, so no
    # lane padding of E (or the narrow feature dims) is required.
    in_specs = [pl.BlockSpec((TM, f), lambda i: (i, 0)) for f in feat]
    in_specs += [pl.BlockSpec(tuple(w.shape), lambda i: (0, 0))
                 for w in w0_chunks]
    in_specs += [pl.BlockSpec(tuple(b_all.shape), lambda i: (0, 0, 0))]
    args = list(flats) + list(w0_chunks) + [b_all]
    if num_layers > 1:
        in_specs += [pl.BlockSpec(tuple(w_rest.shape), lambda i: (0, 0, 0))]
        args += [w_rest]

    kernel = functools.partial(_concat_mlp_kernel,
                               num_inputs=len(flats), num_layers=num_layers)

    out = pl.pallas_call(
        kernel,
        out_shape=jax.ShapeDtypeStruct((M_pad, E), jnp.float32),
        grid=grid,
        in_specs=in_specs,
        out_specs=pl.BlockSpec((TM, E), lambda i: (i, 0)),
        compiler_params=pltpu.CompilerParams(
            dimension_semantics=("parallel",)),
    )(*args)

    # Padded rows (if any) contain relu(bias), not zeros -> slice them off.
    if M_pad != M:
        out = out[:M]
    return out.reshape(*lead, E)


def gnn_input_processor_forward(x, data, *, use_target_vec, use_relevances,
                                params, row_tile=2048):
    """Forward pass matching GNNInputProcessor.forward (eval semantics)."""
    aux_keys, widths, only_rel, _ = _parse_preproc_config(
        use_target_vec, use_relevances, x.shape[-1])
    for k in aux_keys:
        assert data[k].shape[-1] == widths[k], (k, data[k].shape, widths[k])

    # Pre-concatenate the tiny aux tensors into one narrow array (<=64B/row);
    # x stays separate so it is read from HBM exactly once and its concat is
    # fused into the first matmul via the row-split weight chunk.
    aux = None
    if aux_keys:
        auxs = [data[k] for k in aux_keys]
        aux = auxs[0] if len(auxs) == 1 else jnp.concatenate(auxs, axis=-1)

    if only_rel:
        inputs = [aux]
    elif aux is not None:
        inputs = [x, aux]
    else:
        inputs = [x]

    if params is None:
        # processor is None: forward is just the concatenation (pure data
        # movement, nothing to fuse).
        # TODO(synk): no-MLP configuration handled in plain JAX, not Pallas.
        return (jnp.concatenate(inputs, axis=-1)
                if len(inputs) > 1 else inputs[0])
    return fused_concat_mlp(inputs, params, row_tile=row_tile)


def ref_forward(x, data, *, use_target_vec, use_relevances, weights, biases):
    """Pure-JAX f32 reference mirroring the PyTorch module."""
    aux_keys, _, only_rel, _ = _parse_preproc_config(
        use_target_vec, use_relevances, x.shape[-1])
    if only_rel:
        h = jnp.concatenate([data[k] for k in aux_keys], axis=-1)
    elif aux_keys:
        h = jnp.concatenate([x] + [data[k] for k in aux_keys], axis=-1)
    else:
        h = x
    if weights:
        for w, b in zip(weights, biases):
            h = jnp.maximum(h @ w + b, 0.0)
    return h


if __name__ == "__main__":
    # Module config: target-vec+dist (+3), straight relevances (+5),
    # input_size=32 -> intermediate 40, embedding 64, 2 MLP layers.
    use_target_vec = 'target-vec+dist'
    use_relevances = 'straight'
    input_size = 32
    pre_gnn_embedding_size = 64
    pre_gnn_num_mlp_layers = 2

    batch, nodes = 2, 8
    key = jax.random.PRNGKey(0)
    ks = jax.random.split(key, 8)

    x = jax.random.normal(ks[0], (batch, nodes, input_size), jnp.float32)
    data = {
        'target_vec': jax.random.normal(ks[1], (batch, nodes, 3), jnp.float32),
        'relevances': jax.random.normal(ks[2], (batch, nodes, 5), jnp.float32),
    }

    intmd = input_size + 3 + 5
    E = pre_gnn_embedding_size
    assert pre_gnn_num_mlp_layers == 2
    # Linear params stored as (in_dim, out_dim) so forward is x @ W + b.
    w_list = [0.2 * jax.random.normal(ks[3], (intmd, E), jnp.float32),
              0.2 * jax.random.normal(ks[4], (E, E), jnp.float32)]
    b_list = [0.1 * jax.random.normal(ks[5], (E,), jnp.float32),
              0.1 * jax.random.normal(ks[6], (E,), jnp.float32)]

    # One-time parameter preparation (weight split / cast / packing hoisted
    # out of the per-call path).
    params = prepare_gnn_input_processor_params(
        w_list, b_list, use_target_vec=use_target_vec,
        use_relevances=use_relevances, input_size=input_size)

    fwd = jax.jit(lambda x_, d_: gnn_input_processor_forward(
        x_, d_, use_target_vec=use_target_vec,
        use_relevances=use_relevances, params=params))

    out = jax.block_until_ready(fwd(x, data))

    ref = ref_forward(x, data, use_target_vec=use_target_vec,
                      use_relevances=use_relevances,
                      weights=w_list, biases=b_list)
    assert out.shape == (batch, nodes, E), out.shape
    # bf16 matmul operands (f32 accumulation) -> compare at ~1e-2 tolerance.
    max_err = float(jnp.max(jnp.abs(out - ref)))
    assert jnp.allclose(out, ref, atol=5e-2, rtol=5e-2), max_err

    print("KERNEL_OK")
</pallas_src>

<mosaic_0001>
module attributes {stable_mosaic.version = 11 : i64} {
  func.func @_concat_mlp_kernel(%arg0: i32, %arg1: memref<8x32xbf16, #tpu.memory_space<vmem>>, %arg2: memref<8x8xbf16, #tpu.memory_space<vmem>>, %arg3: memref<32x64xbf16, #tpu.memory_space<vmem>>, %arg4: memref<8x64xbf16, #tpu.memory_space<vmem>>, %arg5: memref<2x1x64xf32, #tpu.memory_space<vmem>>, %arg6: memref<1x64x64xbf16, #tpu.memory_space<vmem>>, %arg7: memref<8x64xf32, #tpu.memory_space<vmem>>) attributes {dimension_semantics = [#tpu.dimension_semantics<parallel>], iteration_bounds = array<i64: 2>, scalar_prefetch = 0 : i64, scratch_operands = 0 : i64, tpu.core_type = #tpu.core_type<tc>, window_params = [{transform_indices = @transform_0, window_bounds = array<i64: 8, 32>}, {transform_indices = @transform_1, window_bounds = array<i64: 8, 8>}, {pipeline_mode = #tpu.pipeline_mode<synchronous>, transform_indices = @transform_2, window_bounds = array<i64: 32, 64>}, {pipeline_mode = #tpu.pipeline_mode<synchronous>, transform_indices = @transform_3, window_bounds = array<i64: 8, 64>}, {pipeline_mode = #tpu.pipeline_mode<synchronous>, transform_indices = @transform_4, window_bounds = array<i64: 2, 1, 64>}, {pipeline_mode = #tpu.pipeline_mode<synchronous>, transform_indices = @transform_5, window_bounds = array<i64: 1, 64, 64>}, {transform_indices = @transform_6, window_bounds = array<i64: 8, 64>}]} {
    %c0 = arith.constant 0 : index
    %c0_0 = arith.constant 0 : index
    %0 = vector.load %arg1[%c0, %c0_0] : memref<8x32xbf16, #tpu.memory_space<vmem>>, vector<8x32xbf16>
    %c0_1 = arith.constant 0 : index
    %c0_2 = arith.constant 0 : index
    %1 = vector.load %arg3[%c0_1, %c0_2] : memref<32x64xbf16, #tpu.memory_space<vmem>>, vector<32x64xbf16>
    %cst = arith.constant dense<0.000000e+00> : vector<8x64xf32>
    %2 = tpu.matmul %0, %1, %cst {dimension_numbers = #tpu.dot_dimension_numbers<[1], [0], [0], [1], [0, 0, 1, 1], [], []>} : vector<8x32xbf16>, vector<32x64xbf16>, vector<8x64xf32> -> vector<8x64xf32>
    %c0_3 = arith.constant 0 : index
    %c0_4 = arith.constant 0 : index
    %3 = vector.load %arg2[%c0_3, %c0_4] : memref<8x8xbf16, #tpu.memory_space<vmem>>, vector<8x8xbf16>
    %c0_5 = arith.constant 0 : index
    %c0_6 = arith.constant 0 : index
    %4 = vector.load %arg4[%c0_5, %c0_6] : memref<8x64xbf16, #tpu.memory_space<vmem>>, vector<8x64xbf16>
    %cst_7 = arith.constant dense<0.000000e+00> : vector<8x64xf32>
    %5 = tpu.matmul %3, %4, %cst_7 {dimension_numbers = #tpu.dot_dimension_numbers<[1], [0], [0], [1], [0, 0, 1, 1], [], []>} : vector<8x8xbf16>, vector<8x64xbf16>, vector<8x64xf32> -> vector<8x64xf32>
    %6 = arith.addf %2, %5 : vector<8x64xf32>
    %c0_8 = arith.constant 0 : index
    %c0_9 = arith.constant 0 : index
    %c0_10 = arith.constant 0 : index
    %7 = vector.load %arg5[%c0_8, %c0_9, %c0_10] : memref<2x1x64xf32, #tpu.memory_space<vmem>>, vector<1x1x64xf32>
    %8 = vector.shape_cast %7 : vector<1x1x64xf32> to vector<1x64xf32>
    %9 = vector.broadcast %8 : vector<1x64xf32> to vector<8x64xf32>
    %10 = arith.addf %6, %9 : vector<8x64xf32>
    %cst_11 = arith.constant 0.000000e+00 : f32
    %11 = vector.broadcast %cst_11 : f32 to vector<8x64xf32>
    %12 = arith.maximumf %10, %11 : vector<8x64xf32>
    %c0_12 = arith.constant 0 : index
    %c0_13 = arith.constant 0 : index
    %c0_14 = arith.constant 0 : index
    %13 = vector.load %arg6[%c0_12, %c0_13, %c0_14] : memref<1x64x64xbf16, #tpu.memory_space<vmem>>, vector<1x64x64xbf16>
    %14 = vector.shape_cast %13 : vector<1x64x64xbf16> to vector<64x64xbf16>
    %15 = arith.truncf %12 : vector<8x64xf32> to vector<8x64xbf16>
    %cst_15 = arith.constant dense<0.000000e+00> : vector<8x64xf32>
    %16 = tpu.matmul %15, %14, %cst_15 {dimension_numbers = #tpu.dot_dimension_numbers<[1], [0], [0], [1], [0, 0, 1, 1], [], []>} : vector<8x64xbf16>, vector<64x64xbf16>, vector<8x64xf32> -> vector<8x64xf32>
    %c1 = arith.constant 1 : index
    %c0_16 = arith.constant 0 : index
    %c0_17 = arith.constant 0 : index
    %17 = vector.load %arg5[%c1, %c0_16, %c0_17] : memref<2x1x64xf32, #tpu.memory_space<vmem>>, vector<1x1x64xf32>
    %18 = vector.shape_cast %17 : vector<1x1x64xf32> to vector<1x64xf32>
    %19 = vector.broadcast %18 : vector<1x64xf32> to vector<8x64xf32>
    %20 = arith.addf %16, %19 : vector<8x64xf32>
    %cst_18 = arith.constant 0.000000e+00 : f32
    %21 = vector.broadcast %cst_18 : f32 to vector<8x64xf32>
    %22 = arith.maximumf %20, %21 : vector<8x64xf32>
    %c0_19 = arith.constant 0 : index
    %c0_20 = arith.constant 0 : index
    %23 = vector.load %arg7[%c0_19, %c0_20] : memref<8x64xf32, #tpu.memory_space<vmem>>, vector<8x64xf32>
    tpu.vector_store %arg7[%c0_19, %c0_20], %22 {strides = array<i32>} : memref<8x64xf32, #tpu.memory_space<vmem>>, vector<8x64xf32>,
    return
  }
  func.func @transform_0(%arg0: i32) -> (i32, i32) {
    %c0_i32 = arith.constant 0 : i32
    %c0_i32_0 = arith.constant 0 : i32
    return %arg0, %c0_i32 : i32, i32
  }
  func.func @transform_1(%arg0: i32) -> (i32, i32) {
    %c0_i32 = arith.constant 0 : i32
    %c0_i32_0 = arith.constant 0 : i32
    return %arg0, %c0_i32 : i32, i32
  }
  func.func @transform_2(%arg0: i32) -> (i32, i32) {
    %c0_i32 = arith.constant 0 : i32
    %c0_i32_0 = arith.constant 0 : i32
    %c0_i32_1 = arith.constant 0 : i32
    return %c0_i32, %c0_i32_0 : i32, i32
  }
  func.func @transform_3(%arg0: i32) -> (i32, i32) {
    %c0_i32 = arith.constant 0 : i32
    %c0_i32_0 = arith.constant 0 : i32
    %c0_i32_1 = arith.constant 0 : i32
    return %c0_i32, %c0_i32_0 : i32, i32
  }
  func.func @transform_4(%arg0: i32) -> (i32, i32, i32) {
    %c0_i32 = arith.constant 0 : i32
    %c0_i32_0 = arith.constant 0 : i32
    %c0_i32_1 = arith.constant 0 : i32
    %c0_i32_2 = arith.constant 0 : i32
    return %c0_i32, %c0_i32_0, %c0_i32_1 : i32, i32, i32
  }
  func.func @transform_5(%arg0: i32) -> (i32, i32, i32) {
    %c0_i32 = arith.constant 0 : i32
    %c0_i32_0 = arith.constant 0 : i32
    %c0_i32_1 = arith.constant 0 : i32
    %c0_i32_2 = arith.constant 0 : i32
    return %c0_i32, %c0_i32_0, %c0_i32_1 : i32, i32, i32
  }
  func.func @transform_6(%arg0: i32) -> (i32, i32) {
    %c0_i32 = arith.constant 0 : i32
    %c0_i32_0 = arith.constant 0 : i32
    return %arg0, %c0_i32 : i32, i32
  }
}

</mosaic_0001>

<bundles_post_ra>
// kernel: _lambda_.1
= control target key start
LH: loop header
LB: loop body
LE: loop exit
PB: predicated region body
PF: predicated region fallthrough
CT: control target
= control target key end

     0   :  { %11 = vsyncpa [#allocation3], 0  ;;  %s897_s0 = inlined_call_operand.vmem [shape: bf16[16,32], index: 0, kind: input, shape index: {}]   ;;  %s898_s1 = inlined_call_operand.vmem [shape: bf16[16,8], index: 1, kind: input, shape index: {}]   ;;  %s899_s2 = inlined_call_operand.vmem [shape: bf16[32,64], index: 2, kind: input, shape index: {}]   ;;  %s900_s3 = inlined_call_operand.vmem [shape: bf16[8,64], index: 3, kind: input, shape index: {}]   ;;  %s901_s4 = inlined_call_operand.vmem [shape: f32[2,1,64], index: 4, kind: input, shape index: {}]   ;;  %s902_s5 = inlined_call_operand.vmem [shape: bf16[1,64,64], index: 5, kind: input, shape index: {}]   ;;  %s903_s6 = inlined_call_operand.hbm [shape: f32[16,64], index: 6, kind: output, shape index: {}]  }
   0x1   :  { %13 = vsyncpa [#allocation3 + $0x1], 0  ;;  %s765_s21 = smov 0   ;;  %s767_s22 = smov 0  }
   0x2   :  { %s769_s23 = smov 0   ;;  %s771_s24 = smov 0  }
   0x3 LB: > { %s786_s25 = sadd.s32 4294967295, %s725_s24   ;;  %s557_s26 = sadd.s32 4294967294, %s725_s24   ;;  %s725_s24 = sphi %s771_s24, %s909_s24   ;;  %s721_s23 = sphi %s769_s23, %s908_s23   ;;  %s717_s22 = sphi %s767_s22, %s907_s22   ;;  %s713_s21 = sphi %s765_s21, %s906_s21  }
   0x4   : > { %s790_s27 = sadd.s32 1, %s725_s24   ;;  %s162_s28 = sadd.s32 1, %s721_s23 }
   0x5   : > { %s159_s29 = ssub.s32 %s725_s24, %s790_s27  ;;  %p172_p0 = scmp.ne.s32.totalorder %s721_s23, %s717_s22 }
   0x6   : > { %p160_p1 = scmp.eq.s32.totalorder %s159_s29, 0  ;;  %p173_p2 = scmp.eq.s32.totalorder %s786_s25, 1 }
   0x7   : > { %p178_p3 = scmp.ne.s32.totalorder %s717_s22, %s713_s21  ;;  %p179_p4 = scmp.eq.s32.totalorder %s557_s26, 1 }
   0x8   : > { %s801_s30 = scalar_select %p160_p1, %s721_s23, %s162_s28  }
   0x9   : > { %p803_p5 = por %p173_p2, %p172_p0  ;;  %p807_p6 = por %p179_p4, %p178_p3 }
   0xa   : > { %p560_p7 = scmp.ge.s32.totalorder %s725_s24, 1  ;;  %p223_p8 = scmp.lt.s32.totalorder %s725_s24, 3 }
   0xc   : > { %p224_p9 = pnand %p560_p7, %p223_p8 }
   0xd   : > { %v271_v0 = vld [vmem:[%s900_s3] sm:$0xf] (!%p224_p9)  ;;  %vm276_vm0 = vcmask (!%p224_p9), 1043456   ;;  %p256_p10 = scmp.lt.s32.totalorder (!%p224_p9), %s786_s25, 1  ;;  %v727_v1 = vmov (!%p224_p9), 0.0   ;;  %vm728_vm1 = vmmov (!%p224_p9), 0  }
   0xe   : > { %227 = sbr.rel (%p224_p9) target bundleno = 484 (0x1e4), region = 44  ;;  %590 = vmatprep.subr.bf16.mxu1 (!%p224_p9), %v727_v1  ;;  %v278_v2 = vsel (!%p224_p9), %vm276_vm0, %v271_v0, 0  ;;  %592 = vmatprep.mubr.msk.bf16.mxu1 (!%p224_p9), %vm728_vm1, %v727_v1  ;;  %vm272_vm2 = vcmask (!%p224_p9), 64512   ;;  %v657_v3 = vld [vmem:[%s899_s2] sm:$0xff] (!%p224_p9)   ;;  %v658_v5 = vld [vmem:[%s899_s2 + $0x8] sm:$0xff] (!%p224_p9)   ;;  %vm332_vm3 = vcmask (!%p224_p9), 261120  }
   0xf   : > { %591 = vmatpush3.bf16.msra.mxu1 (!%p224_p9), %v278_v2  ;;  %604 = vmatprep.subr.bf16.mxu0 (!%p224_p9), %v727_v1  ;;  %v659_v7 = vld [vmem:[%s902_s5] sm:$0xff] (!%p224_p9)   ;;  %v660_v8 = vld [vmem:[%s902_s5 + $0x8] sm:$0xff] (!%p224_p9)   ;;  %v661_v9 = vld [vmem:[%s902_s5 + $0x10] sm:$0xff] (!%p224_p9)   ;;  %vm426_vm4 = vcmask (!%p224_p9), 523264   ;;  %s253_s18 = sand.u32 (!%p224_p9), 1, %s717_s22  }
  0x10   : > { %596 = vmatprep.subr.bf16.mxu1 (!%p224_p9), %v727_v1  ;;  %612 = vmatprep.mubr.msk.bf16.mxu0 (!%p224_p9), %vm728_vm1, %v727_v1  ;;  %v662_v10 = vld [vmem:[%s902_s5 + $0x18] sm:$0xff] (!%p224_p9)   ;;  %v568_v16 = vld [vmem:[%s901_s4] ss:$0 sm:$0xff] (!%p224_p9)  ;;  %s561_s19 = sshll.u32 (!%p224_p9), %s253_s18, 3  ;;  %v570_v24 = vld [vmem:[%s901_s4 + $0x1] ss:$0 sm:$0xff] (!%p224_p9) }
  0x11   : > { %605 = vmatpush3.bf16.msra.mxu0 (!%p224_p9), %v659_v7  ;;  %s255_s29 = scalar_lea.vmem (!%p224_p9), [#allocation2], %s561_s19 }
  0x12   : > { %606 = vmatprep.subr.bf16.mxu0 (!%p224_p9), %v727_v1  ;;  %s486_s9 = sshll.u32 (!%p224_p9), %s255_s29, 4  ;;  %s856_s9 = int_to_ptr.vmem [resolvable:$true] %s486_s9 }
  0x13   : > { %s663_s14 = scalar_lea.vmem (!%p224_p9), %s856_s9, 128 }
  0x14   : > { %p664_p11 = scmp.ne.s32.totalorder (!%p224_p9), %s856_s9, %s663_s14 }
  0x15   : > { %s257_s11 = scalar_select %p256_p10, %s786_s25, 1  ;;  %607 = vmatpush3.bf16.msra.mxu0 %v660_v8 }
  0x16   : > { %608 = vmatprep.subr.bf16.mxu0 %v727_v1  ;;  %p665_p12 = pnand %p664_p11, %p803_p5 }
  0x17   : > { %s562_s12 = sshll.u32 %s257_s11, 2 }
  0x18   : > { %s263_s17 = scalar_lea.vmem %s898_s1, %s562_s12  ;;  %s259_s28 = scalar_lea.vmem %s897_s0, %s562_s12 }
  0x19   : > { %v270_v4 = vld [vmem:[%s263_s17] sm:$0xf]  ;;  %609 = vmatpush3.bf16.msra.mxu0 %v661_v9  ;;  %p666_p13 = pneg %p665_p12  ;;  %s729_s12 = smov [#allocation2]  }
  0x1a   : > { %593 = vmatmul.mubr.msk.bf16.vlgmr.msra.gmra.mrb[0].mxu1 %vm272_vm2, %v270_v4  ;;  %v265_v6 = vld [vmem:[%s259_s28] sm:$0xf]  ;;  %610 = vmatprep.subr.bf16.mxu0 %v727_v1  ;;  %s577_s28 = sshll.u32 %s786_s25, 7  ;;  %s473_s25 = scalar_lea.sflag [#allocation3], %s253_s18 }
  0x1b   : > { %597 = vmatpush3.bf16.msra.mxu1 %v657_v3  ;;  %600 = vmatprep.mubr.msk.bf16.mxu1 %vm728_vm1, %v727_v1  ;;  %s854_s13 = scalar_lea.hbm %s903_s6, %s577_s28  ;;  %s667_s15 = sshll.u32 %s729_s12, 4  ;;  %s668_s15 = int_to_ptr.vmem [resolvable:$false] %s667_s15 }
  0x1c   : > { %598 = vmatprep.subr.bf16.mxu1 %v727_v1  ;;  %s669_s16 = scalar_lea.vmem %s668_s15, 256  ;;  %p670_p0 = scmp.lt.s32.totalorder %s856_s9, %s668_s15 }
  0x1d   : > { %611 = vmatpush3.bf16.msra.mxu0 %v662_v10  ;;  %p671_p1 = scmp.lt.s32.totalorder %s669_s16, %s663_s14 }
  0x1f   : > { %599 = vmatpush3.bf16.msra.mxu1 %v658_v5  ;;  %p672_p2 = por %p671_p1, %p670_p0 }
  0x21   : > { %p673_p3 = pnand %p672_p2, %p666_p13 }
  0x22   : > { %601 = vmatmul.mubr.msk.bf16.vlgmr.msra.gmra.mrb[4].mxu1 %vm332_vm3, %v265_v6 }
  0xed   : > { %v314_v11 = vpop.f32.mrb[0].mxu1 }
  0xee   : > { %v594_v12 = vpop.f32.mrb[1].mxu1 }
  0xef   : > { %v317_v13 = vpop.f32.mrb[2].mxu1 }
  0xf0   : > { %v595_v14 = vpop.f32.mrb[3].mxu1 }
  0xf5   : > { %v370_v15 = vpop.f32.mrb[4].mxu1 }
  0xf6   : > { %v371_v17 = vadd.f32 %v370_v15, %v314_v11  ;;  %v602_v18 = vpop.f32.mrb[5].mxu1 }
  0xf7   : > { %v373_v19 = vpop.f32.mrb[6].mxu1 }
  0xf8   : > { %v383_v20 = vadd.f32 %v568_v16, %v371_v17  ;;  %v603_v21 = vpop.f32.mrb[7].mxu1 }
  0xfa   : > { %v384_v22 = vmax.f32 %v383_v20, 0.0 }
  0xfc   : > { %v393_v23 = vpack.c.bf16 %v384_v22, %v384_v22 }
  0xfe   : > { %613 = vmatmul.mubr.msk.bf16.vlgmr.msra.gmra.mrb[0].mxu0 %vm426_vm4, %v393_v23 }
 0x1d1   : > { %v464_v25 = vpop.f32.mrb[0].mxu0 }
 0x1d2   : > { %v465_v26 = vadd.f32 %v570_v24, %v464_v25  ;;  %v614_v27 = vpop.f32.mrb[1].mxu0 }
 0x1d3   : > { %v467_v28 = vpop.f32.mrb[2].mxu0 }
 0x1d4   : > { %v470_v29 = vmax.f32 %v465_v26, 0.0  ;;  %v615_v30 = vpop.f32.mrb[3].mxu0 }
 0x1d6   : > { %471 = vst.msk [vmem:[%s255_s29] sm:$0xff] %vm426_vm4, %v470_v29 }
 0x1d7   : > { %676 = shalt.err (!%p673_p3)
}
 0x1d8   : > { %s677_s17 = scalar_lea.hbm %s854_s13, 128  ;;  %s681_s20 = scalar_lea.hbm %s903_s6, 256 }
 0x1d9   : > { %p678_p4 = scmp.ne.s32.totalorder %s854_s13, %s677_s17  ;;  %p682_p9 = scmp.lt.u32.totalorder %s854_s13, %s903_s6 }
 0x1da   : > { %p683_p10 = scmp.lt.u32.totalorder %s681_s20, %s677_s17  ;;  %p685_p12 = scmp.lt.u32.totalorder %s677_s17, %s854_s13 }
 0x1db   : > { %p679_p7 = pnand %p678_p4, %p803_p5 }
 0x1dc   : > { %p684_p11 = por %p683_p10, %p682_p9 }
 0x1dd   : > { %p680_p8 = pneg %p679_p7 }
 0x1de   : > { %p686_p13 = por %p685_p12, %p684_p11 }
 0x1e0   : > { %p687_p0 = pnand %p686_p13, %p680_p8 }
 0x1e2   : > { %690 = shalt.err (!%p687_p0)
}
 0x1e3   : > { %616 = dma.vmem_to_hbm [thread:$0]  (%p803_p5), %s856_s9, 128, %s854_s13, %s473_s25  }
 0x1e4 PF: > { %p622_p1 = scmp.ge.s32.totalorder %s725_s24, 2  ;;  %s498_s29 = sand.u32 1, %s713_s21  }
 0x1e5   : > { %s499_s10 = scalar_lea.sflag [#allocation3], %s498_s29 }
 0x1e6   : > { %p619_p2 = pnand %p622_p1, %p807_p6 }
 0x1e8   : > { %708 = dma.done.wait (!%p619_p2), %s499_s10, 128  }
 0x1e9   : > { %710 = vsyncadd (!%p619_p2), %s499_s10, 4294967168  ;;  %p16_p3 = scmp.ge.s32.totalorder %s790_s27, 4   ;;  %s906_s21 = smov %s717_s22 }
 0x1ea   : > { %s907_s22 = smov %s721_s23  ;;  %s908_s23 = smov %s801_s30 }
 0x1eb   : > { %s909_s24 = smov %s790_s27  ;;  %18 = sbr.rel (!%p16_p3) target bundleno = 3 (0x3), region = 83 }
 0x1f2   :  { %504 = vsyncpa [#allocation3], 1 }
 0x1f3   :  { %506 = vsyncpa [#allocation3 + $0x1], 1 }

</bundles_post_ra>
